<compile_context>
chip_gen: v5e
topology: v5e:2x2
jax: 0.10.0
libtpu: 0.0.40
codegen_flags: <defaults>
</compile_context>

<pallas_src>
import functools

import jax
import jax.numpy as jnp
import numpy as np
from jax.experimental import pallas as pl
from jax.experimental.pallas import tpu as pltpu

KW = 3  # kernel_size = (1, 3) -> width taps


def subpixel_kernel(x_ref, w_ref, b_ref, o_ref, *, F):
    # x_ref: (Cin, T*F)        input slab, width (F) fastest, flattened on lanes
    # w_ref: (KW, Cout*r, Cin) resident conv weights (one (Cout*r, Cin) per tap)
    # b_ref: (Cout*r, 1)       resident bias
    # o_ref: (Cout*r, T*F)     lane-dense output block
    cin, tf = x_ref.shape
    cout2 = o_ref.shape[0]

    x = x_ref[...]
    # Width position (lane index mod F) of every element, for edge masking.
    fpos = jax.lax.broadcasted_iota(jnp.int32, (cin, tf), 1) % F
    zero = jnp.zeros((), x.dtype)
    # tap k=0: x[t, f-1] (0 at f==0); k=1: x[t, f]; k=2: x[t, f+1] (0 at f==F-1).
    # The shifts are lane rotations (XLU) on the flattened T*F axis; lanes that
    # wrap across a T-row boundary are exactly the masked edge positions.
    x_m1 = jnp.where(fpos == 0, zero, pltpu.roll(x, shift=1, axis=1))
    x_p1 = jnp.where(fpos == F - 1, zero, pltpu.roll(x, shift=tf - 1, axis=1))
    taps = (x_m1, x, x_p1)

    # f32 accumulator initialized from the bias (broadcast once along lanes).
    acc = jnp.broadcast_to(b_ref[...].astype(jnp.float32), (cout2, tf))
    for k in range(KW):  # static unroll; 3 small-K pushes (v7x MRB accumulates in place)
        acc = acc + jnp.dot(w_ref[k], taps[k], preferred_element_type=jnp.float32)
    o_ref[...] = acc.astype(o_ref.dtype)


def subpixel_conv_transpose2d(x, weight, bias, upscale=2):
    """x: (B, Cin, T, F) NCHW; weight: (Cout*r, Cin, 1, KW); bias: (Cout*r,)."""
    B, Cin, T, F = x.shape
    Cout2 = weight.shape[0]
    Cout = Cout2 // upscale
    assert Cout == Cin, "the sub-pixel .view requires out_channels == in_channels"
    assert weight.shape[2] == 1 and weight.shape[3] == KW

    TF = T * F
    # Metadata-only reshape: stays NCHW in HBM; no pad / transpose passes on x.
    xr = x.reshape(B, Cin, TF)
    # (Cout2, Cin, 1, KW) -> (KW, Cout2, Cin): one (Cout2, Cin) matrix per tap.
    wr = jnp.transpose(weight[:, :, 0, :], (2, 0, 1))
    br = bias.reshape(Cout2, 1)

    y = pl.pallas_call(
        functools.partial(subpixel_kernel, F=F),
        out_shape=jax.ShapeDtypeStruct((B, Cout2, TF), x.dtype),
        grid_spec=pltpu.PrefetchScalarGridSpec(
            num_scalar_prefetch=0,
            grid=(B,),  # few large steps; length divisible by 2 (v7x megacore)
            in_specs=[
                pl.BlockSpec((None, Cin, TF), lambda b: (b, 0, 0)),
                pl.BlockSpec((KW, Cout2, Cin), lambda b: (0, 0, 0)),  # resident
                pl.BlockSpec((Cout2, 1), lambda b: (0, 0)),           # resident
            ],
            out_specs=pl.BlockSpec((None, Cout2, TF), lambda b: (b, 0, 0)),
        ),
        compiler_params=pltpu.CompilerParams(dimension_semantics=("parallel",)),
    )(xr, wr, br)

    # Sub-pixel shuffle: conv channel c*r + j -> out[b, c, t, r*f + j].
    # (Single small XLA transpose over the output; the trailing reshape is free.)
    y = y.reshape(B, Cout, upscale, T, F)
    y = jnp.transpose(y, (0, 1, 3, 4, 2)).reshape(B, Cout, T, F * upscale)
    return y


def reference(x, weight, bias, upscale=2):
    """Plain-JAX replica of the PyTorch forward (for verification)."""
    y = jax.lax.conv_general_dilated(
        x, weight, window_strides=(1, 1), padding=((0, 0), (1, 1)),
        dimension_numbers=("NCHW", "OIHW", "NCHW"))
    y = y + bias[None, :, None, None]
    B, _, T, F = y.shape
    C = x.shape[1]
    y = y.reshape(B, C, upscale, T, F)
    y = jnp.transpose(y, (0, 1, 3, 4, 2)).reshape(B, C, T, F * upscale)
    return y


if __name__ == "__main__":
    key = jax.random.PRNGKey(0)
    B, Cin, T, F = 2, 4, 16, 16
    Cout = Cin          # torch .view(b, c, r, t, f) implies out_channels == in_channels
    upscale = 2         # stride = (1, 2)

    k1, k2, k3 = jax.random.split(key, 3)
    x = jax.random.normal(k1, (B, Cin, T, F), dtype=jnp.float32)
    weight = 0.1 * jax.random.normal(k2, (Cout * upscale, Cin, 1, KW), dtype=jnp.float32)
    bias = 0.1 * jax.random.normal(k3, (Cout * upscale,), dtype=jnp.float32)

    out = subpixel_conv_transpose2d(x, weight, bias, upscale=upscale)
    out = jax.block_until_ready(out)

    ref = reference(x, weight, bias, upscale=upscale)
    np.testing.assert_allclose(np.asarray(out), np.asarray(ref), atol=1e-4, rtol=1e-4)
    print("KERNEL_OK")
</pallas_src>

<mosaic_0001>
module attributes {stable_mosaic.version = 11 : i64} {
  func.func @subpixel_kernel(%arg0: i32, %arg1: memref<1x4x256xf32, #tpu.memory_space<vmem>>, %arg2: memref<3x8x4xf32, #tpu.memory_space<vmem>>, %arg3: memref<8x1xf32, #tpu.memory_space<vmem>>, %arg4: memref<1x8x256xf32, #tpu.memory_space<vmem>>) attributes {dimension_semantics = [#tpu.dimension_semantics<parallel>], iteration_bounds = array<i64: 2>, scalar_prefetch = 0 : i64, scratch_operands = 0 : i64, tpu.core_type = #tpu.core_type<tc>, window_params = [{transform_indices = @transform_0, window_bounds = array<i64: 1, 4, 256>}, {pipeline_mode = #tpu.pipeline_mode<synchronous>, transform_indices = @transform_1, window_bounds = array<i64: 3, 8, 4>}, {pipeline_mode = #tpu.pipeline_mode<synchronous>, transform_indices = @transform_2, window_bounds = array<i64: 8, 1>}, {transform_indices = @transform_3, window_bounds = array<i64: 1, 8, 256>}]} {
    %c0 = arith.constant 0 : index
    %c0_0 = arith.constant 0 : index
    %c0_1 = arith.constant 0 : index
    %0 = vector.load %arg1[%c0, %c0_0, %c0_1] : memref<1x4x256xf32, #tpu.memory_space<vmem>>, vector<1x4x256xf32>
    %1 = vector.shape_cast %0 : vector<1x4x256xf32> to vector<4x256xf32>
    %2 = tpu.iota {dimensions = array<i32: 1>} : vector<4x256xi32>
    %c16_i32 = arith.constant 16 : i32
    %c0_i32 = arith.constant 0 : i32
    %3 = arith.cmpi eq, %c16_i32, %c0_i32 : i32
    %c1_i32 = arith.constant 1 : i32
    %4 = arith.select %3, %c1_i32, %c16_i32 : i32
    %5 = vector.broadcast %4 : i32 to vector<4x256xi32>
    %6 = arith.remsi %2, %5 : vector<4x256xi32>
    %c0_i32_2 = arith.constant 0 : i32
    %7 = vector.broadcast %c0_i32_2 : i32 to vector<4x256xi32>
    %8 = arith.cmpi ne, %6, %7 : vector<4x256xi32>
    %c0_i32_3 = arith.constant 0 : i32
    %9 = vector.broadcast %c0_i32_3 : i32 to vector<4x256xi32>
    %10 = arith.cmpi slt, %6, %9 : vector<4x256xi32>
    %c0_i32_4 = arith.constant 0 : i32
    %11 = arith.cmpi slt, %4, %c0_i32_4 : i32
    %12 = vector.broadcast %11 : i1 to vector<4x256xi1>
    %13 = vector.broadcast %12 : vector<4x256xi1> to vector<4x256xi1>
    %14 = arith.xori %10, %13 : vector<4x256xi1>
    %15 = arith.andi %14, %8 : vector<4x256xi1>
    %16 = vector.broadcast %4 : i32 to vector<4x256xi32>
    %17 = arith.addi %6, %16 : vector<4x256xi32>
    %18 = arith.select %15, %17, %6 : vector<4x256xi1>, vector<4x256xi32>
    %c0_i32_5 = arith.constant 0 : i32
    %19 = vector.broadcast %c0_i32_5 : i32 to vector<4x256xi32>
    %20 = arith.cmpi eq, %18, %19 : vector<4x256xi32>
    %c1_i32_6 = arith.constant 1 : i32
    %21 = tpu.dynamic_rotate %1 by %c1_i32_6 dim 1 : vector<4x256xf32>, i32 -> vector<4x256xf32>
    %cst = arith.constant 0.000000e+00 : f32
    %22 = vector.broadcast %cst : f32 to vector<4x256xf32>
    %23 = arith.select %20, %22, %21 : vector<4x256xi1>, vector<4x256xf32>
    %c15_i32 = arith.constant 15 : i32
    %24 = vector.broadcast %c15_i32 : i32 to vector<4x256xi32>
    %25 = arith.cmpi eq, %18, %24 : vector<4x256xi32>
    %c255_i32 = arith.constant 255 : i32
    %26 = tpu.dynamic_rotate %1 by %c255_i32 dim 1 : vector<4x256xf32>, i32 -> vector<4x256xf32>
    %cst_7 = arith.constant 0.000000e+00 : f32
    %27 = vector.broadcast %cst_7 : f32 to vector<4x256xf32>
    %28 = arith.select %25, %27, %26 : vector<4x256xi1>, vector<4x256xf32>
    %c0_8 = arith.constant 0 : index
    %c0_9 = arith.constant 0 : index
    %29 = vector.load %arg3[%c0_8, %c0_9] : memref<8x1xf32, #tpu.memory_space<vmem>>, vector<8x1xf32>
    %30 = vector.shape_cast %29 : vector<8x1xf32> to vector<8x1xf32>
    %31 = vector.broadcast %30 : vector<8x1xf32> to vector<8x256xf32>
    %c0_10 = arith.constant 0 : index
    %c0_11 = arith.constant 0 : index
    %c0_12 = arith.constant 0 : index
    %32 = vector.load %arg2[%c0_10, %c0_11, %c0_12] : memref<3x8x4xf32, #tpu.memory_space<vmem>>, vector<1x8x4xf32>
    %33 = vector.shape_cast %32 : vector<1x8x4xf32> to vector<8x4xf32>
    %cst_13 = arith.constant dense<0.000000e+00> : vector<8x256xf32>
    %34 = tpu.matmul %33, %23, %cst_13 {dimension_numbers = #tpu.dot_dimension_numbers<[1], [0], [0], [1], [0, 0, 1, 1], [], []>} : vector<8x4xf32>, vector<4x256xf32>, vector<8x256xf32> -> vector<8x256xf32>
    %35 = arith.addf %31, %34 : vector<8x256xf32>
    %c1 = arith.constant 1 : index
    %c0_14 = arith.constant 0 : index
    %c0_15 = arith.constant 0 : index
    %36 = vector.load %arg2[%c1, %c0_14, %c0_15] : memref<3x8x4xf32, #tpu.memory_space<vmem>>, vector<1x8x4xf32>
    %37 = vector.shape_cast %36 : vector<1x8x4xf32> to vector<8x4xf32>
    %cst_16 = arith.constant dense<0.000000e+00> : vector<8x256xf32>
    %38 = tpu.matmul %37, %1, %cst_16 {dimension_numbers = #tpu.dot_dimension_numbers<[1], [0], [0], [1], [0, 0, 1, 1], [], []>} : vector<8x4xf32>, vector<4x256xf32>, vector<8x256xf32> -> vector<8x256xf32>
    %39 = arith.addf %35, %38 : vector<8x256xf32>
    %c2 = arith.constant 2 : index
    %c0_17 = arith.constant 0 : index
    %c0_18 = arith.constant 0 : index
    %40 = vector.load %arg2[%c2, %c0_17, %c0_18] : memref<3x8x4xf32, #tpu.memory_space<vmem>>, vector<1x8x4xf32>
    %41 = vector.shape_cast %40 : vector<1x8x4xf32> to vector<8x4xf32>
    %cst_19 = arith.constant dense<0.000000e+00> : vector<8x256xf32>
    %42 = tpu.matmul %41, %28, %cst_19 {dimension_numbers = #tpu.dot_dimension_numbers<[1], [0], [0], [1], [0, 0, 1, 1], [], []>} : vector<8x4xf32>, vector<4x256xf32>, vector<8x256xf32> -> vector<8x256xf32>
    %43 = arith.addf %39, %42 : vector<8x256xf32>
    %c0_20 = arith.constant 0 : index
    %c0_21 = arith.constant 0 : index
    %c0_22 = arith.constant 0 : index
    %44 = vector.load %arg4[%c0_20, %c0_21, %c0_22] : memref<1x8x256xf32, #tpu.memory_space<vmem>>, vector<1x8x256xf32>
    %45 = vector.shape_cast %44 : vector<1x8x256xf32> to vector<8x256xf32>
    %46 = vector.shape_cast %43 : vector<8x256xf32> to vector<1x8x256xf32>
    tpu.vector_store %arg4[%c0_20, %c0_21, %c0_22], %46 {strides = array<i32>} : memref<1x8x256xf32, #tpu.memory_space<vmem>>, vector<1x8x256xf32>,
    return
  }
  func.func @transform_0(%arg0: i32) -> (i32, i32, i32) {
    %c0_i32 = arith.constant 0 : i32
    %c0_i32_0 = arith.constant 0 : i32
    %c0_i32_1 = arith.constant 0 : i32
    return %arg0, %c0_i32, %c0_i32_0 : i32, i32, i32
  }
  func.func @transform_1(%arg0: i32) -> (i32, i32, i32) {
    %c0_i32 = arith.constant 0 : i32
    %c0_i32_0 = arith.constant 0 : i32
    %c0_i32_1 = arith.constant 0 : i32
    %c0_i32_2 = arith.constant 0 : i32
    return %c0_i32, %c0_i32_0, %c0_i32_1 : i32, i32, i32
  }
  func.func @transform_2(%arg0: i32) -> (i32, i32) {
    %c0_i32 = arith.constant 0 : i32
    %c0_i32_0 = arith.constant 0 : i32
    %c0_i32_1 = arith.constant 0 : i32
    return %c0_i32, %c0_i32_0 : i32, i32
  }
  func.func @transform_3(%arg0: i32) -> (i32, i32, i32) {
    %c0_i32 = arith.constant 0 : i32
    %c0_i32_0 = arith.constant 0 : i32
    %c0_i32_1 = arith.constant 0 : i32
    return %arg0, %c0_i32, %c0_i32_0 : i32, i32, i32
  }
}

</mosaic_0001>

<bundles_post_ra>
// kernel: tpu_custom_call.1
= control target key start
LH: loop header
LB: loop body
LE: loop exit
PB: predicated region body
PF: predicated region fallthrough
CT: control target
= control target key end

     0   :  { %8 = vsyncpa [#allocation3], 0  ;;  %s743_s0 = inlined_call_operand.vmem [shape: f32[2,4,256], index: 0, kind: input, shape index: {}]   ;;  %s744_s1 = inlined_call_operand.vmem [shape: f32[3,8,4], index: 1, kind: input, shape index: {}]   ;;  %s745_s2 = inlined_call_operand.vmem [shape: f32[8,1], index: 2, kind: input, shape index: {}]   ;;  %s746_s3 = inlined_call_operand.hbm [shape: f32[2,8,256], index: 3, kind: output, shape index: {}]  }
   0x1   :  { %10 = vsyncpa [#allocation3 + $0x1], 0  ;;  %s634_s12 = smov 0   ;;  %s636_s13 = smov 0  }
   0x2   :  { %s638_s14 = smov 0   ;;  %s640_s15 = smov 0  }
   0x3 LB: > { %s655_s16 = sadd.s32 4294967295, %s609_s15   ;;  %s475_s17 = sadd.s32 4294967294, %s609_s15   ;;  %s609_s15 = sphi %s640_s15, %s752_s15   ;;  %s605_s14 = sphi %s638_s14, %s751_s14   ;;  %s601_s13 = sphi %s636_s13, %s750_s13   ;;  %s597_s12 = sphi %s634_s12, %s749_s12  }
   0x4   : > { %s659_s18 = sadd.s32 1, %s609_s15   ;;  %s91_s19 = sadd.s32 1, %s605_s14 }
   0x5   : > { %s88_s20 = ssub.s32 %s609_s15, %s659_s18  ;;  %p101_p0 = scmp.ne.s32.totalorder %s605_s14, %s601_s13 }
   0x6   : > { %p89_p1 = scmp.eq.s32.totalorder %s88_s20, 0  ;;  %p102_p2 = scmp.eq.s32.totalorder %s655_s16, 1 }
   0x7   : > { %p107_p3 = scmp.ne.s32.totalorder %s601_s13, %s597_s12  ;;  %p108_p4 = scmp.eq.s32.totalorder %s475_s17, 1 }
   0x8   : > { %s670_s21 = scalar_select %p89_p1, %s605_s14, %s91_s19  }
   0x9   : > { %p672_p5 = por %p102_p2, %p101_p0  ;;  %p676_p6 = por %p108_p4, %p107_p3 }
   0xa   : > { %p478_p7 = scmp.ge.s32.totalorder %s609_s15, 1  ;;  %p140_p8 = scmp.lt.s32.totalorder %s609_s15, 3 }
   0xc   : > { %p141_p9 = pnand %p478_p7, %p140_p8 }
   0xd   : > { %p164_p10 = scmp.lt.s32.totalorder (!%p141_p9), %s655_s16, 1  ;;  %s611_s29 = smov (!%p141_p9), 1  }
   0xe   : > { %144 = sbr.rel (%p141_p9) target bundleno = 298 (0x12a), region = 32  ;;  %s612_s30 = smov (!%p141_p9), 127  }
   0xf   : > { %s161_s17 = sand.u32 (!%p141_p9), 1, %s601_s13   ;;  %s502_s20 = sshll.u32 (!%p141_p9), %s655_s16, 4 }
  0x10   : > { %s479_s19 = sshll.u32 (!%p141_p9), %s161_s17, 4  ;;  %s411_s26 = scalar_lea.hbm (!%p141_p9), %s746_s3, %s502_s20 }
  0x11   : > { %s163_s27 = scalar_lea.vmem (!%p141_p9), [#allocation2], %s479_s19  ;;  %s567_s7 = scalar_lea.hbm (!%p141_p9), %s746_s3, 32 }
  0x13   : > { %s165_s24 = scalar_select %p164_p10, %s655_s16, 1  ;;  %vm241_vm0 = vcmask 1043456   ;;  %vm237_vm1 = vcmask 31744   ;;  %v486_v7 = vld [vmem:[%s744_s1 + $0x8] sm:$0xff]  ;;  %v230_v8 = vld [vmem:[%s745_s2] sm:$0xff]  ;;  %v613_v9 = vmov 0   ;;  %v170_v10 = vlaneseq }
  0x14   : > { %545 = vset.pattern.permute.xlu2 %v613_v9  ;;  %546 = vset.pattern.permute.xlu0 %v613_v9  ;;  %v236_v20 = vld [vmem:[%s744_s1] sm:$0xff]  ;;  %v491_v26 = vld [vmem:[%s744_s1 + $0x10] sm:$0xff]  ;;  %s400_s16 = scalar_lea.sflag [#allocation3], %s161_s17 }
  0x15   : > { %s501_s25 = sshll.u32 %s165_s24, 3  ;;  %233 = vperm.xlu2 %545, %v230_v8   ;;  %v171_v11 = vand.u32 127, %v170_v10 }
  0x16   : > { %s168_s28 = scalar_lea.vmem %s743_s0, %s501_s25 }
  0x17   : > { %v169_v0 = vld [vmem:[%s168_s28] sm:$0xff]  ;;  %v172_v12 = vadd.s32 128, %v171_v11  ;;  %v177_v14 = vand.u32 15, %v171_v11  ;;  %vm209_vm2 = vcmp.lt.s32.totalorder %v171_v11, 1  ;;  %vm225_vm5 = vcmp.lt.s32.totalorder %v171_v11, 127  ;;  %s413_s28 = sshll.u32 %s163_s27, 4  ;;  %s414_s28 = int_to_ptr.vmem [resolvable:$true] %s413_s28 }
  0x18   : > { %200 = vst [vmem:[#allocation1] ss:$2 sm:$0xff] %v169_v0 }
  0x19   : > { %v184_v15 = vand.u32 15, %v172_v12  ;;  %vm197_vm3 = vcmp.eq.s32.totalorder %v177_v14, 0  ;;  %vm214_vm6 = vcmp.eq.s32.totalorder %v177_v14, 15 }
  0x1b   : > { %vm198_vm4 = vcmp.eq.s32.totalorder %v184_v15, 0  ;;  %vm215_vm7 = vcmp.eq.s32.totalorder %v184_v15, 15 }
  0x1f   : > { %v201_v1 = vld.sshfl [vmem:[#allocation1] sm:$0xff pattern:$0x75316420]  ;;  %v202_v2 = vld.sshfl [vmem:[#allocation1 + $0x8] sm:$0xff pattern:$0x75316420] }
  0x20   : > { %205 = vrot.lane.b32.xlu0 %v201_v1, %s611_s29  ;;  %216 = vst [vmem:[#allocation1] ss:$2 sm:$0xff] %v169_v0 }
  0x27   : > { %v217_v3 = vld.sshfl [vmem:[#allocation1] sm:$0xff pattern:$0x75316420]  ;;  %v218_v4 = vld.sshfl [vmem:[#allocation1 + $0x8] sm:$0xff pattern:$0x75316420] }
  0x28   : > { %207 = vrot.lane.b32.xlu0 %v202_v2, %s611_s29  ;;  %221 = vrot.lane.b32.xlu1 %v217_v3, %s612_s30  ;;  %292 = vst [vmem:[#allocation1] ss:$2 sm:$0xff] %v169_v0  ;;  %s415_s29 = sshll.u32 %s411_s26, 4  ;;  %s416_s29 = int_to_ptr.hbm [resolvable:$true] %s415_s29 }
  0x2f   : > { %v293_v5 = vld.sshfl [vmem:[#allocation1] sm:$0xff pattern:$0x75316420]  ;;  %v294_v6 = vld.sshfl [vmem:[#allocation1 + $0x8] sm:$0xff pattern:$0x75316420] }
  0x30   : > { %223 = vrot.lane.b32.xlu1 %v218_v4, %s612_s30  ;;  %487 = vmatpush.msk.msra.mxu2 %vm241_vm0, %v293_v5  ;;  %s561_s30 = sshra.s32 %s416_s29, 4  ;;  %s562_s30 = int_to_ptr.hbm [resolvable:$true] %s561_s30 }
  0x31   : > { %489 = vmatpush.msk.msra.mxu3 %vm241_vm0, %v294_v6  ;;  %488 = vmatmul.msk.f32.vlgmr.msra.gmra.mxu2 %vm237_vm1, %v486_v7  ;;  %s563_s4 = scalar_lea.hbm %s562_s30, 16  ;;  %p568_p0 = scmp.lt.s32.totalorder %s562_s30, %s746_s3 }
  0x32   : > { %490 = vmatmul.msk.f32.vlgmr.msra.gmra.mxu3 %vm237_vm1, %v486_v7  ;;  %p564_p11 = scmp.ne.s32.totalorder %s562_s30, %s563_s4  ;;  %p569_p1 = scmp.lt.s32.totalorder %s567_s7, %s563_s4 }
  0x34   : > { %p565_p12 = pnand %p564_p11, %p672_p5  ;;  %p570_p2 = por %p569_p1, %p568_p0 }
  0x36   : > { %p566_p13 = pneg %p565_p12 }
  0x38   : > { %p571_p3 = pnand %p570_p2, %p566_p13 }
  0x6f   : > { %v234_v29 = vpop.permute.xlu2 %233 }
  0x92   : > { %v206_v13 = vpop.permute.xlu0 %205 }
  0x9a   : > { %v208_v16 = vpop.permute.xlu0 %207  ;;  %v222_v17 = vpop.permute.xlu1 %221 }
  0x9b   : > { %v211_v18 = vsel %vm209_vm2, %v208_v16, %v206_v13  ;;  %v210_v19 = vsel %vm209_vm2, %v206_v13, %v208_v16 }
  0x9c   : > { %v212_v21 = vsel %vm197_vm3, 0.0, %v211_v18  ;;  %v213_v22 = vsel %vm198_vm4, 0.0, %v210_v19 }
  0x9d   : > { %482 = vmatpush.msk.msra.mxu0 %vm241_vm0, %v212_v21  ;;  %484 = vmatpush.msk.msra.mxu1 %vm241_vm0, %v213_v22 }
  0x9e   : > { %483 = vmatmul.msk.f32.vlgmr.msra.gmra.mxu0 %vm237_vm1, %v236_v20  ;;  %485 = vmatmul.msk.f32.vlgmr.msra.gmra.mxu1 %vm237_vm1, %v236_v20 }
  0xa2   : > { %v224_v23 = vpop.permute.xlu1 %223 }
  0xa3   : > { %v226_v24 = vsel %vm225_vm5, %v222_v17, %v224_v23  ;;  %v227_v25 = vsel %vm225_vm5, %v224_v23, %v222_v17 }
  0xa4   : > { %v228_v27 = vsel %vm214_vm6, 0.0, %v226_v24  ;;  %v229_v28 = vsel %vm215_vm7, 0.0, %v227_v25 }
  0xa5   : > { %492 = vmatpush.msk.msrb.mxu0 %vm241_vm0, %v228_v27  ;;  %494 = vmatpush.msk.msrb.mxu1 %vm241_vm0, %v229_v28 }
  0xa6   : > { %493 = vmatmul.msk.f32.vlgmr.msrb.gmra.mxu0 %vm237_vm1, %v491_v26  ;;  %495 = vmatmul.msk.f32.vlgmr.msrb.gmra.mxu1 %vm237_vm1, %v491_v26 }
  0xb4   : > { %v319_v34 = vpop.f32.mrf.mxu2 }
  0xb5   : > { %v339_v35 = vpop.f32.mrf.mxu3 }
 0x11b   : > { %v265_v30 = vpop.f32.mrf.mxu0  ;;  %v285_v31 = vpop.f32.mrf.mxu1 }
 0x11c   : > { %v288_v32 = vadd.f32 %v265_v30, %v234_v29  ;;  %v289_v33 = vadd.f32 %v285_v31, %v234_v29 }
 0x11e   : > { %v342_v36 = vadd.f32 %v319_v34, %v288_v32  ;;  %v343_v37 = vadd.f32 %v339_v35, %v289_v33 }
 0x123   : > { %v372_v38 = vpop.f32.mrf.mxu0  ;;  %v392_v39 = vpop.f32.mrf.mxu1 }
 0x124   : > { %v395_v40 = vadd.f32 %v372_v38, %v342_v36  ;;  %v396_v41 = vadd.f32 %v392_v39, %v343_v37 }
 0x126   : > { %397 = vst [vmem:[%s163_s27] sm:$0xff] %v395_v40 }
 0x127   : > { %398 = vst [vmem:[%s163_s27 + $0x8] sm:$0xff] %v396_v41 }
 0x128   : > { %574 = shalt.err (!%p571_p3)
}
 0x129   : > { %503 = dma.vmem_to_hbm [thread:$0]  (%p672_p5), %s414_s28, 256, %s416_s29, %s400_s16  }
 0x12a PF: > { %p509_p4 = scmp.ge.s32.totalorder %s609_s15, 2  ;;  %s427_s10 = sand.u32 1, %s597_s12  }
 0x12b   : > { %s428_s11 = scalar_lea.sflag [#allocation3], %s427_s10 }
 0x12c   : > { %p506_p7 = pnand %p509_p4, %p676_p6 }
 0x12e   : > { %p507_p8 = pneg %p506_p7 }
 0x130   : > { %592 = dma.done.wait (%p507_p8), %s428_s11, 256  }
 0x131   : > { %594 = vsyncadd (%p507_p8), %s428_s11, 4294967040  ;;  %p13_p9 = scmp.ge.s32.totalorder %s659_s18, 4   ;;  %s749_s12 = smov %s601_s13 }
 0x132   : > { %s750_s13 = smov %s605_s14  ;;  %s751_s14 = smov %s670_s21 }
 0x133   : > { %s752_s15 = smov %s659_s18  ;;  %15 = sbr.rel (!%p13_p9) target bundleno = 3 (0x3), region = 69 }
 0x138   :  { %434 = vsyncpa [#allocation3], 1 }
 0x139   :  { %436 = vsyncpa [#allocation3 + $0x1], 1 }

</bundles_post_ra>
